<compile_context>
chip_gen: v6e
topology: v6e:2x2x1
jax: 0.10.0
libtpu: 0.0.40
codegen_flags: <defaults>
</compile_context>

<pallas_src>
import functools

import jax
import jax.numpy as jnp
import numpy as np
from jax.experimental import pallas as pl
from jax.experimental.pallas import tpu as pltpu


# ---------------------------------------------------------------------------
# Kernels
# ---------------------------------------------------------------------------
def scse_kernel(x_ref, w1t_ref, w2t_ref, wc_ref, bc_ref, o_ref, *, inv_hw):
    """Single-pass SCSE: whole (Nb, C, HW) block resident in VMEM."""
    x = x_ref[...]                                             # (Nb, C, HW), input dtype

    # ---- cSE: global average pool -> fc1 -> relu -> fc2 -> sigmoid ----
    pooled = jnp.sum(x, axis=-1, dtype=jnp.float32) * inv_hw   # (Nb, C) f32
    h = jnp.dot(pooled, w1t_ref[...], preferred_element_type=jnp.float32)
    h = jnp.maximum(h, 0.0)                                    # (Nb, Cr)
    ch = jnp.dot(h, w2t_ref[...], preferred_element_type=jnp.float32)
    ch_scale = jax.nn.sigmoid(ch).astype(x.dtype)[:, :, None]  # (Nb, C, 1)

    # ---- sSE: 1x1 conv (C -> 1) + bias -> sigmoid (VPU mul + sublane reduce) ----
    wc = wc_ref[...].astype(x.dtype)                           # (1, C, 1)
    sp = jnp.sum(x * wc, axis=1, keepdims=True, dtype=jnp.float32)  # (Nb, 1, HW) f32
    sp_scale = jax.nn.sigmoid(sp + bc_ref[0]).astype(x.dtype)  # (Nb, 1, HW)

    # ---- cSE(x) + sSE(x) = x * (ch_scale + sp_scale), single fused store ----
    o_ref[...] = (x * (ch_scale + sp_scale)).astype(o_ref.dtype)


def cse_pool_kernel(x_ref, w1t_ref, w2t_ref, scale_ref, acc_ref, *, inv_hw, hw, ts):
    """Fallback pass 1: accumulate global pool over HW tiles, emit cSE scale."""
    t = pl.program_id(1)

    @pl.when(t == 0)
    def _():
        acc_ref[...] = jnp.zeros_like(acc_ref)

    x = x_ref[...]                                             # (1, C, ts)
    # Mask the tail tile (tile may extend past the real HW extent).
    lane = jax.lax.broadcasted_iota(jnp.int32, (1, 1, ts), 2) + t * ts
    xm = jnp.where(lane < hw, x, jnp.zeros_like(x))
    acc_ref[...] += jnp.sum(xm, axis=-1, dtype=jnp.float32)    # (1, C)

    @pl.when(t == pl.num_programs(1) - 1)
    def _():
        pooled = acc_ref[...] * inv_hw                         # (1, C) f32
        h = jnp.dot(pooled, w1t_ref[...], preferred_element_type=jnp.float32)
        h = jnp.maximum(h, 0.0)
        ch = jnp.dot(h, w2t_ref[...], preferred_element_type=jnp.float32)
        scale_ref[...] = jax.nn.sigmoid(ch)[:, :, None]        # (1, C, 1) f32


def scse_apply_kernel(x_ref, scale_ref, wc_ref, bc_ref, o_ref):
    """Fallback pass 2: apply x * (cSE_scale + sigmoid(1x1 conv)) per HW tile."""
    x = x_ref[...]                                             # (1, C, ts)
    wc = wc_ref[...].astype(x.dtype)                           # (1, C, 1)
    sp = jnp.sum(x * wc, axis=1, keepdims=True, dtype=jnp.float32)   # (1, 1, ts)
    sp_scale = jax.nn.sigmoid(sp + bc_ref[0]).astype(x.dtype)
    ch_scale = scale_ref[...].astype(x.dtype)                  # (1, C, 1)
    # OOB lanes of a tail tile are never written back; valid lanes are exact.
    o_ref[...] = (x * (ch_scale + sp_scale)).astype(o_ref.dtype)


# ---------------------------------------------------------------------------
# Wrapper
# ---------------------------------------------------------------------------
def _tpu_vmem_caps():
    """Best-effort (target_block_bytes, vmem_limit_cap) per chip generation."""
    try:
        vmem = pltpu.get_tpu_info().vmem_capacity_bytes
    except Exception:
        vmem = None
    if vmem is not None and vmem >= 96 * 1024 * 1024:          # v5e / v6e: 128 MiB
        return 4 * 1024 * 1024, 64 * 1024 * 1024
    return 2 * 1024 * 1024, 48 * 1024 * 1024                   # v7x: 64 MiB per TC


def _scse_single_pass(x_r, w1t, w2t, wc, bc, hw, target_block_bytes, vmem_cap):
    N, C, _ = x_r.shape
    Cr = w1t.shape[1]
    itemsize = jnp.dtype(x_r.dtype).itemsize

    # Batch items per grid step: large enough (~target_block_bytes) to amortize
    # the ~0.35us/step overhead, but keep >= min(N, 4) grid steps so both v7x
    # TensorCores get work and DMA/compute overlap has something to pipeline.
    per_item = C * hw * itemsize
    nb_cap = max(1, target_block_bytes // per_item)
    min_steps = min(N, 4)
    nb_cap = min(nb_cap, max(1, N // min_steps))
    Nb = 1
    for d in range(1, N + 1):
        if N % d == 0 and d <= nb_cap:
            Nb = d

    # Working set: 2x in + 2x out double buffers (input dtype) + ~3 f32
    # full-block temporaries (sSE product, broadcast scale sum, output product).
    block_elems = Nb * C * hw
    io_bytes = 4 * block_elems * itemsize
    tmp_bytes = 3 * block_elems * 4
    vmem_limit = int(min(vmem_cap,
                         max(16 * 1024 * 1024, io_bytes + tmp_bytes + (2 << 20))))

    return pl.pallas_call(
        functools.partial(scse_kernel, inv_hw=1.0 / hw),
        out_shape=jax.ShapeDtypeStruct((N, C, hw), x_r.dtype),
        grid_spec=pltpu.PrefetchScalarGridSpec(
            num_scalar_prefetch=0,
            grid=(N // Nb,),
            in_specs=[
                pl.BlockSpec((Nb, C, hw), lambda n: (n, 0, 0)),
                pl.BlockSpec((C, Cr), lambda n: (0, 0)),
                pl.BlockSpec((Cr, C), lambda n: (0, 0)),
                pl.BlockSpec((1, C, 1), lambda n: (0, 0, 0)),
                pl.BlockSpec(memory_space=pltpu.MemorySpace.SMEM),
            ],
            out_specs=pl.BlockSpec((Nb, C, hw), lambda n: (n, 0, 0)),
        ),
        compiler_params=pltpu.CompilerParams(
            dimension_semantics=("parallel",),
            vmem_limit_bytes=vmem_limit,
        ),
    )(x_r, w1t, w2t, wc, bc)


def _scse_two_pass(x_r, w1t, w2t, wc, bc, hw, target_block_bytes, vmem_cap):
    """HW-tiled fallback for spatial sizes whose full extent does not fit VMEM."""
    N, C, _ = x_r.shape
    Cr = w1t.shape[1]
    itemsize = jnp.dtype(x_r.dtype).itemsize

    # Lane-dense spatial tile (multiple of 128) targeting ~target_block_bytes.
    ts = max(128, (target_block_bytes // (C * itemsize)) // 128 * 128)
    ts = min(ts, pl.cdiv(hw, 128) * 128)
    nt = pl.cdiv(hw, ts)

    # ---- pass 1: global average pool (accumulated over tiles) -> cSE scale ----
    ch_scale = pl.pallas_call(
        functools.partial(cse_pool_kernel, inv_hw=1.0 / hw, hw=hw, ts=ts),
        out_shape=jax.ShapeDtypeStruct((N, C, 1), jnp.float32),
        grid_spec=pltpu.PrefetchScalarGridSpec(
            num_scalar_prefetch=0,
            grid=(N, nt),
            in_specs=[
                pl.BlockSpec((1, C, ts), lambda n, t: (n, 0, t)),
                pl.BlockSpec((C, Cr), lambda n, t: (0, 0)),
                pl.BlockSpec((Cr, C), lambda n, t: (0, 0)),
            ],
            out_specs=pl.BlockSpec((1, C, 1), lambda n, t: (n, 0, 0)),
            scratch_shapes=[pltpu.VMEM((1, C), jnp.float32)],
        ),
        compiler_params=pltpu.CompilerParams(
            dimension_semantics=("parallel", "arbitrary"),
            vmem_limit_bytes=int(min(vmem_cap,
                                     max(16 * 1024 * 1024,
                                         3 * C * ts * itemsize + (2 << 20)))),
        ),
    )(x_r, w1t, w2t)

    # ---- pass 2: apply x * (cSE_scale + sigmoid(1x1 conv)) per tile ----
    out = pl.pallas_call(
        scse_apply_kernel,
        out_shape=jax.ShapeDtypeStruct((N, C, hw), x_r.dtype),
        grid_spec=pltpu.PrefetchScalarGridSpec(
            num_scalar_prefetch=0,
            grid=(N, nt),
            in_specs=[
                pl.BlockSpec((1, C, ts), lambda n, t: (n, 0, t)),
                pl.BlockSpec((1, C, 1), lambda n, t: (n, 0, 0)),
                pl.BlockSpec((1, C, 1), lambda n, t: (0, 0, 0)),
                pl.BlockSpec(memory_space=pltpu.MemorySpace.SMEM),
            ],
            out_specs=pl.BlockSpec((1, C, ts), lambda n, t: (n, 0, t)),
        ),
        compiler_params=pltpu.CompilerParams(
            dimension_semantics=("parallel", "parallel"),
            vmem_limit_bytes=int(min(vmem_cap,
                                     max(16 * 1024 * 1024,
                                         C * ts * (4 * itemsize + 12) + (2 << 20)))),
        ),
    )(x_r, ch_scale, wc, bc)
    return out


def scse_pallas(x, w1, w2, w_conv, b_conv, *,
                target_block_bytes=None, vmem_budget_bytes=None,
                force_two_pass=False):
    """x: (N, C, H, W). w1: (Cr, C), w2: (C, Cr), w_conv: (1, C, 1, 1), b_conv: (1,)."""
    N, C, H, W = x.shape
    HW = H * W
    itemsize = jnp.dtype(x.dtype).itemsize

    tb_default, cap_default = _tpu_vmem_caps()
    if target_block_bytes is None:
        target_block_bytes = tb_default
    if vmem_budget_bytes is None:
        vmem_budget_bytes = cap_default

    x_r = x.reshape(N, C, HW)                        # free metadata reshape
    w1t = jnp.asarray(w1, jnp.float32).T             # (C, Cr)
    w2t = jnp.asarray(w2, jnp.float32).T             # (Cr, C)
    wc = jnp.asarray(w_conv).reshape(1, C, 1).astype(x.dtype)  # channel column
    bc = jnp.asarray(b_conv, jnp.float32).reshape(1)           # scalar -> SMEM

    # Working set for a single batch item in the single-pass kernel:
    # 2x in + 2x out double buffers + ~3 f32 full-block temporaries.
    per_item_ws = C * HW * (4 * itemsize + 12)
    if (not force_two_pass) and per_item_ws + (2 << 20) <= vmem_budget_bytes:
        out = _scse_single_pass(x_r, w1t, w2t, wc, bc, HW,
                                target_block_bytes, vmem_budget_bytes)
    else:
        out = _scse_two_pass(x_r, w1t, w2t, wc, bc, HW,
                             target_block_bytes, vmem_budget_bytes)
    return out.reshape(N, C, H, W)


# ---------------------------------------------------------------------------
# Pure-JAX reference (mirrors the PyTorch SCSE forward)
# ---------------------------------------------------------------------------
def scse_reference(x, w1, w2, w_conv, b_conv):
    N, C, H, W = x.shape
    y = jnp.mean(x, axis=(2, 3))                       # (N, C)
    y = jnp.maximum(y @ w1.T, 0.0)                     # (N, Cr)
    y = jax.nn.sigmoid(y @ w2.T)                       # (N, C)
    cse = x * y[:, :, None, None]
    sp = jnp.einsum('nchw,c->nhw', x, w_conv.reshape(-1)) + b_conv[0]
    sse = x * jax.nn.sigmoid(sp)[:, None, :, :]
    return cse + sse


if __name__ == "__main__":
    # Shapes consistent with SCSE(in_ch=16, r=4): batch=2, 16 channels.
    N, C, r = 2, 16, 4
    Cr = C // r

    key = jax.random.PRNGKey(0)
    kx, k1, k2, k3, k4, kx2 = jax.random.split(key, 6)
    # Linear(width, width//r, bias=False): weight (Cr, C)
    w1 = jax.random.normal(k1, (Cr, C), dtype=jnp.float32) * 0.1
    # Linear(width//r, width, bias=False): weight (C, Cr)
    w2 = jax.random.normal(k2, (C, Cr), dtype=jnp.float32) * 0.1
    # Conv2d(in_ch, 1, kernel_size=1): weight (1, C, 1, 1), bias (1,)
    w_conv = jax.random.normal(k3, (1, C, 1, 1), dtype=jnp.float32) * 0.1
    b_conv = jax.random.normal(k4, (1,), dtype=jnp.float32) * 0.1

    # 1) Main single-pass path, 128-multiple spatial (16x16).
    x = jax.random.normal(kx, (N, C, 16, 16), dtype=jnp.float32)
    out = jax.block_until_ready(scse_pallas(x, w1, w2, w_conv, b_conv))
    ref = scse_reference(x, w1, w2, w_conv, b_conv)
    assert out.shape == x.shape
    np.testing.assert_allclose(np.asarray(out), np.asarray(ref), atol=1e-5, rtol=1e-5)

    # 2) Single-pass path with HW not a multiple of 128 (no pad/slice round trip).
    x2 = jax.random.normal(kx2, (N, C, 13, 13), dtype=jnp.float32)
    out2 = jax.block_until_ready(scse_pallas(x2, w1, w2, w_conv, b_conv))
    ref2 = scse_reference(x2, w1, w2, w_conv, b_conv)
    np.testing.assert_allclose(np.asarray(out2), np.asarray(ref2), atol=1e-5, rtol=1e-5)

    # 3) HW-tiled two-pass fallback (forced at small shape to validate the path
    #    used when a full batch item does not fit the v7x VMEM budget).
    out3 = jax.block_until_ready(
        scse_pallas(x2, w1, w2, w_conv, b_conv,
                    target_block_bytes=8192, force_two_pass=True))
    np.testing.assert_allclose(np.asarray(out3), np.asarray(ref2), atol=1e-5, rtol=1e-5)

    print("KERNEL_OK")
</pallas_src>

<mosaic_0001>
module attributes {stable_mosaic.version = 11 : i64} {
  func.func @scse_kernel(%arg0: i32, %arg1: memref<1x16x256xf32, #tpu.memory_space<vmem>>, %arg2: memref<16x4xf32, #tpu.memory_space<vmem>>, %arg3: memref<4x16xf32, #tpu.memory_space<vmem>>, %arg4: memref<1x16x1xf32, #tpu.memory_space<vmem>>, %arg5: memref<1xf32, #tpu.memory_space<smem>>, %arg6: memref<1x16x256xf32, #tpu.memory_space<vmem>>) attributes {dimension_semantics = [#tpu.dimension_semantics<parallel>], iteration_bounds = array<i64: 2>, scalar_prefetch = 0 : i64, scratch_operands = 0 : i64, tpu.core_type = #tpu.core_type<tc>, window_params = [{transform_indices = @transform_0, window_bounds = array<i64: 1, 16, 256>}, {pipeline_mode = #tpu.pipeline_mode<synchronous>, transform_indices = @transform_1, window_bounds = array<i64: 16, 4>}, {pipeline_mode = #tpu.pipeline_mode<synchronous>, transform_indices = @transform_2, window_bounds = array<i64: 4, 16>}, {pipeline_mode = #tpu.pipeline_mode<synchronous>, transform_indices = @transform_3, window_bounds = array<i64: 1, 16, 1>}, {transform_indices = @transform_4, window_bounds = array<i64: 1>}, {transform_indices = @transform_5, window_bounds = array<i64: 1, 16, 256>}]} {
    %c0 = arith.constant 0 : index
    %c0_0 = arith.constant 0 : index
    %c0_1 = arith.constant 0 : index
    %0 = vector.load %arg1[%c0, %c0_0, %c0_1] : memref<1x16x256xf32, #tpu.memory_space<vmem>>, vector<1x16x256xf32>
    %cst = arith.constant dense<0.000000e+00> : vector<1x16xf32>
    %1 = vector.multi_reduction <add>, %0, %cst [2] : vector<1x16x256xf32> to vector<1x16xf32>
    %cst_2 = arith.constant 3.906250e-03 : f32
    %2 = vector.broadcast %cst_2 : f32 to vector<1x16xf32>
    %3 = arith.mulf %1, %2 : vector<1x16xf32>
    %c0_3 = arith.constant 0 : index
    %c0_4 = arith.constant 0 : index
    %4 = vector.load %arg2[%c0_3, %c0_4] : memref<16x4xf32, #tpu.memory_space<vmem>>, vector<16x4xf32>
    %cst_5 = arith.constant dense<0.000000e+00> : vector<1x4xf32>
    %5 = tpu.matmul %3, %4, %cst_5 {dimension_numbers = #tpu.dot_dimension_numbers<[1], [0], [0], [1], [0, 0, 1, 1], [], []>} : vector<1x16xf32>, vector<16x4xf32>, vector<1x4xf32> -> vector<1x4xf32>
    %cst_6 = arith.constant 0.000000e+00 : f32
    %6 = vector.broadcast %cst_6 : f32 to vector<1x4xf32>
    %7 = arith.maximumf %5, %6 : vector<1x4xf32>
    %c0_7 = arith.constant 0 : index
    %c0_8 = arith.constant 0 : index
    %8 = vector.load %arg3[%c0_7, %c0_8] : memref<4x16xf32, #tpu.memory_space<vmem>>, vector<4x16xf32>
    %cst_9 = arith.constant dense<0.000000e+00> : vector<1x16xf32>
    %9 = tpu.matmul %7, %8, %cst_9 {dimension_numbers = #tpu.dot_dimension_numbers<[1], [0], [0], [1], [0, 0, 1, 1], [], []>} : vector<1x4xf32>, vector<4x16xf32>, vector<1x16xf32> -> vector<1x16xf32>
    %10 = arith.negf %9 : vector<1x16xf32>
    %11 = math.exp %10 : vector<1x16xf32>
    %cst_10 = arith.constant 1.000000e+00 : f32
    %12 = vector.broadcast %cst_10 : f32 to vector<1x16xf32>
    %13 = arith.addf %12, %11 : vector<1x16xf32>
    %14 = arith.divf %12, %13 : vector<1x16xf32>
    %15 = vector.shape_cast %14 : vector<1x16xf32> to vector<1x16x1xf32>
    %c0_11 = arith.constant 0 : index
    %c0_12 = arith.constant 0 : index
    %c0_13 = arith.constant 0 : index
    %16 = vector.load %arg4[%c0_11, %c0_12, %c0_13] : memref<1x16x1xf32, #tpu.memory_space<vmem>>, vector<1x16x1xf32>
    %17 = vector.broadcast %16 : vector<1x16x1xf32> to vector<1x16x256xf32>
    %18 = arith.mulf %0, %17 : vector<1x16x256xf32>
    %cst_14 = arith.constant dense<0.000000e+00> : vector<1x256xf32>
    %19 = vector.multi_reduction <add>, %18, %cst_14 [1] : vector<1x16x256xf32> to vector<1x256xf32>
    %20 = vector.shape_cast %19 : vector<1x256xf32> to vector<1x1x256xf32>
    %c0_15 = arith.constant 0 : index
    %21 = memref.load %arg5[%c0_15] : memref<1xf32, #tpu.memory_space<smem>>
    %22 = vector.broadcast %21 : f32 to vector<1x1x256xf32>
    %23 = arith.addf %20, %22 : vector<1x1x256xf32>
    %24 = arith.negf %23 : vector<1x1x256xf32>
    %25 = math.exp %24 : vector<1x1x256xf32>
    %cst_16 = arith.constant 1.000000e+00 : f32
    %26 = vector.broadcast %cst_16 : f32 to vector<1x1x256xf32>
    %27 = arith.addf %26, %25 : vector<1x1x256xf32>
    %28 = arith.divf %26, %27 : vector<1x1x256xf32>
    %29 = vector.broadcast %15 : vector<1x16x1xf32> to vector<1x16x256xf32>
    %30 = vector.broadcast %28 : vector<1x1x256xf32> to vector<1x16x256xf32>
    %31 = arith.addf %29, %30 : vector<1x16x256xf32>
    %32 = arith.mulf %0, %31 : vector<1x16x256xf32>
    %c0_17 = arith.constant 0 : index
    %c0_18 = arith.constant 0 : index
    %c0_19 = arith.constant 0 : index
    %33 = vector.load %arg6[%c0_17, %c0_18, %c0_19] : memref<1x16x256xf32, #tpu.memory_space<vmem>>, vector<1x16x256xf32>
    tpu.vector_store %arg6[%c0_17, %c0_18, %c0_19], %32 {strides = array<i32>} : memref<1x16x256xf32, #tpu.memory_space<vmem>>, vector<1x16x256xf32>,
    return
  }
  func.func @transform_0(%arg0: i32) -> (i32, i32, i32) {
    %c0_i32 = arith.constant 0 : i32
    %c0_i32_0 = arith.constant 0 : i32
    %c0_i32_1 = arith.constant 0 : i32
    return %arg0, %c0_i32, %c0_i32_0 : i32, i32, i32
  }
  func.func @transform_1(%arg0: i32) -> (i32, i32) {
    %c0_i32 = arith.constant 0 : i32
    %c0_i32_0 = arith.constant 0 : i32
    %c0_i32_1 = arith.constant 0 : i32
    return %c0_i32, %c0_i32_0 : i32, i32
  }
  func.func @transform_2(%arg0: i32) -> (i32, i32) {
    %c0_i32 = arith.constant 0 : i32
    %c0_i32_0 = arith.constant 0 : i32
    %c0_i32_1 = arith.constant 0 : i32
    return %c0_i32, %c0_i32_0 : i32, i32
  }
  func.func @transform_3(%arg0: i32) -> (i32, i32, i32) {
    %c0_i32 = arith.constant 0 : i32
    %c0_i32_0 = arith.constant 0 : i32
    %c0_i32_1 = arith.constant 0 : i32
    %c0_i32_2 = arith.constant 0 : i32
    return %c0_i32, %c0_i32_0, %c0_i32_1 : i32, i32, i32
  }
  func.func @transform_4(%arg0: i32) -> i32 {
    %c0_i32 = arith.constant 0 : i32
    %c0_i32_0 = arith.constant 0 : i32
    return %c0_i32 : i32
  }
  func.func @transform_5(%arg0: i32) -> (i32, i32, i32) {
    %c0_i32 = arith.constant 0 : i32
    %c0_i32_0 = arith.constant 0 : i32
    %c0_i32_1 = arith.constant 0 : i32
    return %arg0, %c0_i32, %c0_i32_0 : i32, i32, i32
  }
}

</mosaic_0001>

<bundles_post_ra>
// kernel: tpu_custom_call.1
= control target key start
LH: loop header
LB: loop body
LE: loop exit
PB: predicated region body
PF: predicated region fallthrough
CT: control target
= control target key end

     0   :  { %s1023_s0 = inlined_call_operand.hbm [shape: f32[2,16,256], index: 0, kind: input, shape index: {}]   ;;  %s1024_s1 = inlined_call_operand.vmem [shape: f32[16,4], index: 1, kind: input, shape index: {}]   ;;  %s1025_s2 = inlined_call_operand.vmem [shape: f32[4,16], index: 2, kind: input, shape index: {}]   ;;  %s1026_s3 = inlined_call_operand.vmem [shape: f32[1,16,1], index: 3, kind: input, shape index: {}]   ;;  %s1027_s4 = inlined_call_operand.<no memory space> [shape: f32[1], index: 4, kind: input, shape index: {}]   ;;  %s1028_s5 = inlined_call_operand.hbm [shape: f32[2,16,256], index: 5, kind: output, shape index: {}]  }
   0x1   :  { %10 = sst [smem:[#allocation2]] %s1027_s4 }
   0x2   :  { %11 = vsyncpa [#allocation4], 0 }
   0x3   :  { %13 = vsyncpa [#allocation4 + $0x1], 0 }
   0x4   :  { %14 = vsyncpa [#allocation5], 0 }
   0x5   :  { %16 = vsyncpa [#allocation5 + $0x1], 0  ;;  %s830_s20 = smov 0   ;;  %s832_s21 = smov 0  }
   0x6   :  { %s834_s22 = smov 0   ;;  %s836_s23 = smov 0  }
   0x7 LB: > { %s851_s4 = sadd.s32 4294967295, %s786_s23   ;;  %s588_s24 = sadd.s32 4294967294, %s786_s23   ;;  %s786_s23 = sphi %s836_s23, %s1043_s23   ;;  %s782_s22 = sphi %s834_s22, %s1042_s22   ;;  %s778_s21 = sphi %s832_s21, %s1041_s21   ;;  %s774_s20 = sphi %s830_s20, %s1040_s20  }
   0x8   : > { %s855_s25 = sadd.s32 1, %s786_s23   ;;  %s29_s26 = sadd.s32 1, %s782_s22 }
   0x9   : > { %s26_s27 = ssub.s32 %s786_s23, %s855_s25  ;;  %p36_p0 = scmp.ne.s32.totalorder %s782_s22, %s778_s21 }
   0xa   : > { %p27_p1 = scmp.eq.s32.totalorder %s26_s27, 0  ;;  %p37_p2 = scmp.eq.s32.totalorder %s786_s23, 0 }
   0xb   : > { %p42_p3 = scmp.ne.s32.totalorder %s778_s21, %s774_s20  ;;  %p43_p4 = scmp.eq.s32.totalorder %s851_s4, 0 }
   0xc   : > { %s867_s28 = scalar_select %p27_p1, %s782_s22, %s29_s26  }
   0xd   : > { %p869_p5 = por %p37_p2, %p36_p0  ;;  %p873_p6 = por %p43_p4, %p42_p3 }
   0xe   : > { %p150_p7 = scmp.eq.s32.totalorder %s851_s4, 1  ;;  %p156_p8 = scmp.eq.s32.totalorder %s588_s24, 1 }
   0xf   : > { %s1032_s30 = scalar_select %p873_p6, 1, 0 }
  0x10   : > { %p639_p10 = scmp.lt.s32.totalorder %s786_s23, 2  ;;  %p880_p11 = por %p150_p7, %p36_p0 }
  0x11   : > { %p884_p12 = por %p156_p8, %p42_p3  ;;  %s188_s8 = sand.u32 1, %s782_s22  }
  0x12   : > { %s1033_s6 = scalar_select %p880_p11, 1, 0 }
  0x13   : > { %s1034_s7 = scalar_select %p884_p12, 1, 0 }
  0x14   : > { %s608_s9 = sshll.u32 %s786_s23, 9  ;;  %s591_s10 = sshll.u32 %s188_s8, 5 }
  0x15   : > { %s893_s13 = scalar_lea.hbm %s1023_s0, %s608_s9  ;;  %s192_s14 = scalar_lea.vmem [#allocation3], %s591_s10 }
  0x16   : > { %s199_s15 = sshll.u32 %s192_s14, 4  ;;  %p897_p13 = pnand %p639_p10, %p869_p5  ;;  %s901_s15 = int_to_ptr.vmem [resolvable:$true] %s199_s15 }
  0x17   : > { %s903_s17 = scalar_lea.sflag [#allocation4], %s188_s8  ;;  %s694_s18 = scalar_lea.hbm %s893_s13, 512 }
  0x18   : > { %p695_p0 = scmp.ne.s32.totalorder %s893_s13, %s694_s18  ;;  %p696_p1 = pneg %p897_p13 }
  0x19   : > { %s699_s26 = scalar_lea.hbm %s1023_s0, 1024  ;;  %p700_p4 = scmp.lt.s32.totalorder %s893_s13, %s1023_s0 }
  0x1a   : > { %p697_p2 = pnand %p696_p1, %p695_p0  ;;  %p701_p5 = scmp.lt.s32.totalorder %s699_s26, %s694_s18 }
  0x1c   : > { %p698_p3 = pneg %p697_p2  ;;  %p702_p7 = por %p701_p5, %p700_p4 }
  0x1e   : > { %p703_p8 = pnand %p702_p7, %p698_p3 }
  0x20   : > { %706 = shalt.err (!%p703_p8)
}
  0x21   : > { %s707_s8 = scalar_lea.vmem %s901_s15, 512  ;;  %s788_s9 = smov [#allocation3]  }
  0x22   : > { %p708_p10 = scmp.ne.s32.totalorder %s901_s15, %s707_s8  ;;  %s712_s10 = sshll.u32 %s788_s9, 4  ;;  %s713_s10 = int_to_ptr.vmem [resolvable:$false] %s712_s10 }
  0x23   : > { %s714_s11 = scalar_lea.vmem %s713_s10, 1024  ;;  %p715_p2 = scmp.lt.s32.totalorder %s901_s15, %s713_s10 }
  0x24   : > { %p710_p9 = pnand %p708_p10, %p696_p1  ;;  %p716_p12 = scmp.lt.s32.totalorder %s714_s11, %s707_s8 }
  0x26   : > { %p711_p0 = pneg %p710_p9  ;;  %p717_p11 = por %p716_p12, %p715_p2 }
  0x28   : > { %p718_p6 = pnand %p717_p11, %p711_p0 }
  0x2a   : > { %721 = shalt.err (!%p718_p6)
}
  0x2b   : > { %s789_s12 = smov 256   ;;  %s790_s14 = smov 16  }
  0x2c   : > { %634 = dma.hbm_to_vmem [thread:$0]  (!%p897_p13), %s893_s13, 512, %s901_s15, %s903_s17, %s789_s12, %s789_s12, %s790_s14  }
  0x2d   : > { %p594_p9 = scmp.ge.s32.totalorder %s786_s23, 1  ;;  %p207_p1 = scmp.lt.s32.totalorder %s786_s23, 3 }
  0x2f   : > { %p208_p3 = pnand %p594_p9, %p207_p1 }
  0x30   : > { %s927_s18 = sand.u32 (!%p208_p3), 1, %s778_s21   ;;  %p1036_p6 = scmp.ne.s32.totalorder (!%p208_p3), %s1032_s30, 0 }
  0x31   : > { %211 = sbr.rel (%p208_p3) target bundleno = 761 (0x2f9), region = 40  ;;  %s595_s19 = sshll.u32 (!%p208_p3), %s927_s18, 5 }
  0x32   : > { %s214_s24 = scalar_lea.sflag (!%p208_p3), [#allocation4], %s927_s18  ;;  %s217_s26 = scalar_lea.vmem (!%p208_p3), [#allocation3], %s595_s19 }
  0x36   : > { %765 = dma.done.wait (%p1036_p6), %s214_s24, 512  }
  0x37   : > { %767 = vsyncadd (%p1036_p6), %s214_s24, 4294966784  ;;  %v937_v0 = vld [vmem:[%s217_s26] sm:$0xff]  ;;  %v939_v1 = vld [vmem:[%s217_s26 + $0x8] sm:$0xff]  ;;  %v791_v6 = vmov 0.0   ;;  %vm792_vm0 = vmmov 0   ;;  %v260_v9 = vlaneseq  ;;  %vm271_vm1 = vcmask 130112  }
  0x38   : > { %v941_v2 = vld [vmem:[%s217_s26 + $0x10] sm:$0xff]  ;;  %v248_v3 = vadd.f32 %v939_v1, %v937_v0  ;;  %v945_v4 = vld [vmem:[%s217_s26 + $0x18] sm:$0xff]  ;;  %615 = vmatprep.subr.mxu0 %v791_v6  ;;  %v257_v7 = vld [vmem:[%s1024_s1 + $0x8] sm:$0xff]  ;;  %622 = vmatprep.subr.mxu1 %v791_v6  ;;  %vm273_vm2 = vcmask 130048   ;;  %vm352_vm3 = vcmask 1043456   ;;  %v793_v24 = vmov 0  }
  0x39   : > { %v251_v5 = vadd.f32 %v945_v4, %v941_v2  ;;  %616 = vmatpush3.msra.mxu0 %v257_v7  ;;  %v256_v8 = vld [vmem:[%s1024_s1] sm:$0xff]  ;;  %619 = vmatprep.mubr.msk.f32.mxu0 %vm792_vm0, %v791_v6  ;;  %v261_v10 = vand.u32 127, %v260_v9  ;;  %v263_v11 = vshrl.u32 %v260_v9, 7  ;;  %v444_v25 = vld [vmem:[%s1026_s3 + $0x8] sm:$0xff]  ;;  %vm348_vm4 = vcmask 31744   ;;  %s473_s11 = sld [smem:[#allocation2]] }
  0x3a   : > { %249 = vadd.xlane.f32.xlu0 %v248_v3  ;;  %617 = vmatprep.subr.mxu0 %v791_v6  ;;  %v347_v22 = vld [vmem:[%s1025_s2] sm:$0xf]  ;;  %s243_s12 = scalar_lea.vmem [#allocation6], %s595_s19  ;;  %s609_s24 = sshll.u32 %s851_s4, 9 }
  0x3b   : > { %618 = vmatpush3.msra.mxu0 %v256_v8  ;;  %624 = vmatprep.mubr.msk.f32.mxu1 %vm792_vm0, %v791_v6  ;;  %v266_v12 = vadd.s32 4294967288, %v261_v10  ;;  %v264_v14 = vsub.s32 %v261_v10, %v263_v11  ;;  %v443_v23 = vld [vmem:[%s1026_s3] sm:$0xff]  ;;  %v434_v34 = vsub.s32 0, %v263_v11  ;;  %s515_s14 = sshll.u32 %s243_s12, 4  ;;  %s976_s19 = scalar_lea.hbm %s1028_s5, %s609_s24  ;;  %s971_s14 = int_to_ptr.vmem [resolvable:$true] %s515_s14 }
  0x3c   : > { %623 = vmatpush3.msk.msra.mxu1 %vm352_vm3, %v347_v22  ;;  %680 = vset.pattern.permute.xlu1 %v793_v24  ;;  %s502_s4 = scalar_lea.sflag [#allocation5], %s927_s18  ;;  %s722_s13 = scalar_lea.vmem %s971_s14, 512 }
  0x3d   : > { %v269_v16 = vsub.s32 %v266_v12, %v263_v11  ;;  %681 = vset.pattern.permute.xlu0 %v793_v24  ;;  %447 = vperm.xlu1 %680, %v443_v23   ;;  %p723_p11 = scmp.ne.s32.totalorder %s971_s14, %s722_s13  ;;  %p1037_p12 = scmp.ne.s32.totalorder %s1033_s6, 0 }
  0x3e   : > { %252 = vadd.xlane.f32.xlu0 %v251_v5  ;;  %s794_s15 = smov [#allocation6]  }
  0x3f   : > { %v474_v56 = vstv %s473_s11  ;;  %p724_p13 = pnand %p723_p11, %p1037_p12  ;;  %s726_s16 = sshll.u32 %s794_s15, 4  ;;  %s727_s16 = int_to_ptr.vmem [resolvable:$false] %s726_s16 }
  0x40   : > { %s728_s17 = scalar_lea.vmem %s727_s16, 1024  ;;  %p729_p5 = scmp.lt.s32.totalorder %s971_s14, %s727_s16 }
  0x41   : > { %452 = vperm.xlu1 %680, %v444_v25   ;;  %p725_p4 = pneg %p724_p13  ;;  %p730_p7 = scmp.lt.s32.totalorder %s728_s17, %s722_s13 }
  0x43   : > { %p731_p8 = por %p730_p7, %p729_p5 }
  0x45   : > { %p732_p10 = pnand %p731_p8, %p725_p4 }
  0xb8   : > { %v448_v37 = vpop.permute.xlu1 %447 }
  0xb9   : > { %v455_v39 = vmul.f32 %v448_v37, %v937_v0  ;;  %v456_v41 = vmul.f32 %v448_v37, %v939_v1 }
  0xbc   : > { %v453_v38 = vpop.permute.xlu1 %452 }
  0xbd   : > { %v457_v40 = vmul.f32 %v453_v38, %v941_v2  ;;  %v458_v42 = vmul.f32 %v453_v38, %v945_v4 }
  0xbf   : > { %v459_v43 = vadd.f32 %v457_v40, %v455_v39  ;;  %v466_v44 = vadd.f32 %v458_v42, %v456_v41 }
  0xc1   : > { %v460_v45 = vrot.slane %v459_v43, 4  ;;  %v467_v46 = vrot.slane %v466_v44, 4 }
  0xc3   : > { %v250_v13 = vpop.xlane.xlu0 %249  ;;  %v461_v47 = vadd.f32 %v460_v45, %v459_v43  ;;  %v468_v48 = vadd.f32 %v467_v46, %v466_v44 }
  0xc4   : > { %v254_v15 = vmul.f32 0.00390625, %v250_v13 }
  0xc5   : > { %v462_v49 = vrot.slane %v461_v47, 2  ;;  %v469_v50 = vrot.slane %v468_v48, 2 }
  0xc6   : > { %v265_v19 = vrot.slane %v254_v15, %v264_v14 }
  0xc7   : > { %v253_v17 = vpop.xlane.xlu0 %252  ;;  %v463_v51 = vadd.f32 %v462_v49, %v461_v47  ;;  %v470_v52 = vadd.f32 %v469_v50, %v468_v48 }
  0xc8   : > { %v255_v18 = vmul.f32 0.00390625, %v253_v17 }
  0xc9   : > { %v464_v53 = vrot.slane %v463_v51, 1  ;;  %v471_v54 = vrot.slane %v470_v52, 1 }
  0xca   : > { %v270_v20 = vrot.slane %v255_v18, %v269_v16 }
  0xcb   : > { %v465_v55 = vadd.f32 %v464_v53, %v463_v51  ;;  %v472_v57 = vadd.f32 %v471_v54, %v470_v52 }
  0xcc   : > { %v272_v21 = vsel %vm271_vm1, %v270_v20, %v265_v19 }
  0xcd   : > { %620 = vmatmul.mubr.msk.f32.vlgmr.msra.gmra.mxu0 %vm273_vm2, %v272_v21  ;;  %v475_v58 = vadd.f32 %v474_v56, %v465_v55  ;;  %v476_v59 = vadd.f32 %v474_v56, %v472_v57 }
  0xcf   : > { %v601_v60 = vmul.f32 -1.442695, %v475_v58  ;;  %v602_v61 = vmul.f32 -1.442695, %v476_v59 }
 0x18d   : > { %v342_v26 = vpop.f32.mrf.mxu0 }
 0x18e   : > { %v346_v27 = vmax.f32 %v342_v26, 0.0 }
 0x18f   : > { %v621_v28 = vpop.f32.mrf.mxu0 }
 0x190   : > { %625 = vmatmul.mubr.msk.f32.vlgmr.msra.gmra.mxu1 %vm348_vm4, %v346_v27 }
 0x250   : > { %v422_v29 = vpop.f32.mrf.mxu1 }
 0x251   : > { %v600_v30 = vmul.f32 -1.442695, %v422_v29 }
 0x252   : > { %v626_v31 = vpop.f32.mrf.mxu1 }
 0x253   : > { %682 = vpow2.f32 %v600_v30 }
 0x260   : > { %v683_v32 = vpop.eup %682 }
 0x261   : > { %v429_v33 = vadd.f32 1.0, %v683_v32 }
 0x263   : > { %684 = vrcp.f32 %v429_v33 }
 0x264   : > { %686 = vpow2.f32 %v601_v60 }
 0x265   : > { %688 = vpow2.f32 %v602_v61 }
 0x270   : > { %v685_v35 = vpop.eup %684 }
 0x271   : > { %v435_v36 = vrot.slane %v685_v35, %v434_v34  ;;  %v687_v62 = vpop.eup %686 }
 0x272   : > { %v689_v63 = vpop.eup %688  ;;  %v483_v3 = vadd.f32 1.0, %v687_v62 }
 0x273   : > { %441 = vbcast.lane.b32.xlu1 %v435_v36, 264  ;;  %437 = vbcast.lane.b32.xlu0 %v435_v36, 256  ;;  %v484_v5 = vadd.f32 1.0, %v689_v63 }
 0x274   : > { %690 = vrcp.f32 %v483_v3 }
 0x275   : > { %692 = vrcp.f32 %v484_v5 }
 0x281   : > { %v691_v6 = vpop.eup %690 }
 0x282   : > { %v693_v7 = vpop.eup %692 }
 0x2e5   : > { %v442_v8 = vpop.permute.xlu1 %441  ;;  %v438_v9 = vpop.permute.xlu0 %437 }
 0x2e6   : > { %v491_v10 = vadd.f32 %v691_v6, %v442_v8  ;;  %v492_v11 = vadd.f32 %v693_v7, %v442_v8  ;;  %v489_v12 = vadd.f32 %v691_v6, %v438_v9  ;;  %v490_v13 = vadd.f32 %v693_v7, %v438_v9 }
 0x2e8   : > { %v495_v14 = vmul.f32 %v491_v10, %v941_v2  ;;  %v496_v15 = vmul.f32 %v492_v11, %v945_v4  ;;  %v493_v16 = vmul.f32 %v489_v12, %v937_v0  ;;  %v494_v17 = vmul.f32 %v490_v13, %v939_v1 }
 0x2ea   : > { %499 = vst [vmem:[%s243_s12 + $0x10] sm:$0xff] %v495_v14  ;;  %500 = vst [vmem:[%s243_s12 + $0x18] sm:$0xff] %v496_v15 }
 0x2eb   : > { %497 = vst [vmem:[%s243_s12] sm:$0xff] %v493_v16  ;;  %498 = vst [vmem:[%s243_s12 + $0x8] sm:$0xff] %v494_v17 }
 0x2ec   : > { %735 = shalt.err (!%p732_p10)
}
 0x2ed   : > { %s736_s27 = scalar_lea.hbm %s976_s19, 512  ;;  %s740_s9 = scalar_lea.hbm %s1028_s5, 1024 }
 0x2ee   : > { %p737_p0 = scmp.ne.s32.totalorder %s976_s19, %s736_s27  ;;  %p741_p1 = scmp.lt.s32.totalorder %s976_s19, %s1028_s5 }
 0x2ef   : > { %p742_p3 = scmp.lt.s32.totalorder %s740_s9, %s736_s27 }
 0x2f0   : > { %p738_p2 = pnand %p737_p0, %p1037_p12 }
 0x2f1   : > { %p743_p6 = por %p742_p3, %p741_p1 }
 0x2f2   : > { %p739_p9 = pneg %p738_p2 }
 0x2f4   : > { %p744_p11 = pnand %p743_p6, %p739_p9 }
 0x2f6   : > { %747 = shalt.err (!%p744_p11)
}
 0x2f7   : > { %s795_s12 = smov 256   ;;  %s796_s24 = smov 16  }
 0x2f8   : > { %629 = dma.vmem_to_hbm [thread:$0]  (%p1037_p12), %s971_s14, 512, %s976_s19, %s502_s4, %s795_s12, %s795_s12, %s796_s24  }
 0x2f9 PF: > { %s530_s26 = sand.u32 1, %s774_s20   ;;  %p1038_p13 = scmp.ne.s32.totalorder %s1034_s7, 0 }
 0x2fa   : > { %p1039_p4 = scmp.ge.s32.totalorder %s786_s23, 2  ;;  %s531_s30 = scalar_lea.sflag [#allocation5], %s530_s26 }
 0x2fc   : > { %p636_p5 = pnand %p1039_p4, %p1038_p13 }
 0x2fe   : > { %p637_p7 = pneg %p636_p5 }
 0x300   : > { %769 = dma.done.wait (%p637_p7), %s531_s30, 512  }
 0x301   : > { %771 = vsyncadd (%p637_p7), %s531_s30, 4294966784  ;;  %p19_p8 = scmp.ge.s32.totalorder %s855_s25, 4   ;;  %s1040_s20 = smov %s778_s21 }
 0x302   : > { %s1041_s21 = smov %s782_s22  ;;  %s1042_s22 = smov %s867_s28 }
 0x303   : > { %s1043_s23 = smov %s855_s25  ;;  %21 = sbr.rel (!%p19_p8) target bundleno = 7 (0x7), region = 85 }
 0x308   :  { %536 = vsyncpa [#allocation4], 1 }
 0x309   :  { %538 = vsyncpa [#allocation4 + $0x1], 1 }
 0x30a   :  { %539 = vsyncpa [#allocation5], 1 }
 0x30b   :  { %541 = vsyncpa [#allocation5 + $0x1], 1 }

</bundles_post_ra>
